<compile_context>
chip_gen: v7x
topology: tpu7x:2x2x1
jax: 0.10.0
libtpu: 0.0.40
codegen_flags: <defaults>
</compile_context>

<pallas_src>
import functools

import jax
import jax.numpy as jnp
import numpy as np
from jax import lax
from jax.experimental import pallas as pl
from jax.experimental.pallas import tpu as pltpu

KH = KW = 4
STRIDE = 2
PAD = 1
EPS = 1e-5          # PyTorch InstanceNorm2d default eps
NEG_SLOPE = 0.2     # LeakyReLU(0.2)


def _round_up(x, m):
    return (x + m - 1) // m * m


def _vmem_capacity_bytes():
    try:
        return int(pltpu.get_tpu_info().vmem_capacity_bytes)
    except Exception:
        return 128 * 1024 * 1024


_VMEM_CAP = _vmem_capacity_bytes()
# Per-buffer bf16 patch-tile budget: ~2 MiB on 64 MiB-VMEM parts (v7x), ~4 MiB on 128 MiB parts.
_PATCH_BUDGET = 2 * 1024 * 1024 if _VMEM_CAP <= 64 * 1024 * 1024 else 4 * 1024 * 1024
_VMEM_LIMIT = min(int(_VMEM_CAP * 3 // 4), 100 * 1024 * 1024)
# Target for the f32 VMEM-resident (c_out_blk, hw_pad) output block before splitting channels.
_OUT_BLOCK_TARGET = 8 * 1024 * 1024


def _choose_hw_tiling(hw, k_pad, patch_budget_bytes):
    """Returns (tile_hw, hw_pad), both 128-aligned; biggest patch tile within the VMEM budget."""
    hw128 = _round_up(max(hw, 128), 128)
    max_tile = (patch_budget_bytes // (k_pad * 2)) // 128 * 128   # bf16 patch columns per tile
    max_tile = max(max_tile, 512)      # below 512 lanes, per-grid-step overhead dominates
    if hw128 <= max_tile:
        return hw128, hw128            # single tile
    return max_tile, _round_up(hw, max_tile)


def _choose_cout_groups(n, c_out, hw_pad):
    """Number of output-channel groups (extra 'parallel' grid axis)."""
    def ok(g):
        return c_out % g == 0 and (c_out // g) % 8 == 0
    groups = 1
    # Bound the f32 VMEM-resident output block (matters on v7x for large images).
    while ok(groups * 2) and (c_out // groups) * hw_pad * 4 > _OUT_BLOCK_TARGET:
        groups *= 2
    # batch == 1: split channels so both v7x TensorCores get parallel work (stats are per-channel).
    if n == 1 and groups == 1 and ok(2):
        groups = 2
    return groups


def _unet_down_kernel(p_ref, w_ref, o_ref, ssum_ref, *,
                      hw_true, hw_pad, c_out_blk, tile_hw, n_tiles):
    """Grid = (batch, c_out groups, hw tiles).

    p_ref:  (1, K_pad, tile_hw)           bf16 im2col patch tile (K tap-major)
    w_ref:  (1, c_out_blk_pad, K_pad)     bf16 conv weight block for this channel group
    o_ref:  (1, c_out_blk, hw_pad)        f32 output block, VMEM-resident across the hw-tile axis
    ssum_ref: (c_out_blk, 1)              f32 running per-channel sum
    """
    t = pl.program_id(2)

    @pl.when(t == 0)
    def _init():
        ssum_ref[...] = jnp.zeros_like(ssum_ref)

    # Conv tile as a bf16 MXU matmul with f32 accumulation: (c_out_blk_pad, tile_hw).
    y = jnp.dot(w_ref[0], p_ref[0], preferred_element_type=jnp.float32)
    y = y[:c_out_blk, :]                                   # drop sublane-granule padding rows

    # One-pass per-channel sum (padded patch columns are exactly zero -> contribute nothing).
    ssum_ref[...] += jnp.sum(y, axis=1, keepdims=True)

    # Stage the raw conv tile into the resident channel-major output block.
    if n_tiles == 1:
        o_ref[0, :, :] = y
    else:
        off = pl.multiple_of(t * tile_hw, tile_hw)         # tile_hw is a multiple of 128
        o_ref[0, :, pl.ds(off, tile_hw)] = y

    # Fused InstanceNorm + LeakyReLU epilogue over the resident block.
    @pl.when(t == n_tiles - 1)
    def _finalize():
        inv_hw = 1.0 / float(hw_true)
        n_pad = float(hw_pad - hw_true)                    # zero-padded spatial columns
        mean = ssum_ref[...] * inv_hw                      # (c_out_blk, 1)
        d = o_ref[0] - mean                                # (c_out_blk, hw_pad)
        # Two-pass variance (no E[y^2]-E[y]^2 cancellation); pad columns hold y == 0 exactly,
        # so their (0 - mean)^2 contribution is removed analytically.
        ss = jnp.sum(d * d, axis=1, keepdims=True) - n_pad * (mean * mean)
        var = jnp.maximum(ss, 0.0) * inv_hw
        scale = lax.rsqrt(var + EPS)                       # EUP rsqrt
        z = d * scale
        o_ref[0] = jnp.maximum(z, NEG_SLOPE * z)           # LeakyReLU(0.2) as a single vmax


def _im2col_tap_major(x, h_out, w_out):
    """x: (N, C, H, W) -> patches (N, KH*KW*C, h_out*w_out); K ordered tap-major (kh, kw, c_in)
    to match weight.transpose(0, 2, 3, 1).reshape(c_out, K) — no 5-D transpose in the prologue."""
    n, c, h, w = x.shape
    x_pad = jnp.pad(x, ((0, 0), (0, 0), (PAD, PAD), (PAD, PAD)))
    taps = []
    for ki in range(KH):
        for kj in range(KW):
            taps.append(x_pad[:, :, ki:ki + STRIDE * h_out:STRIDE,
                              kj:kj + STRIDE * w_out:STRIDE])     # (N, C, h_out, w_out)
    patches = jnp.stack(taps, axis=1)                             # (N, 16, C, h_out, w_out)
    return patches.reshape(n, KH * KW * c, h_out * w_out)


@jax.jit
def unet_down(x, weight):
    """x: (N, C_in, H, W) f32; weight: (C_out, C_in, 4, 4) f32 (Conv2d 4/2/1, bias=False).
    Returns (N, C_out, H//2, W//2) f32 == Conv -> InstanceNorm2d -> LeakyReLU(0.2)."""
    n, c_in, h, w = x.shape
    c_out = weight.shape[0]
    h_out, w_out = h // 2, w // 2
    hw = h_out * w_out
    k = c_in * KH * KW

    k_pad = _round_up(k, 128)
    tile_hw, hw_pad = _choose_hw_tiling(hw, k_pad, _PATCH_BUDGET)
    n_tiles = hw_pad // tile_hw
    groups = _choose_cout_groups(n, c_out, hw_pad)
    c_out_blk = c_out // groups
    c_out_blk_pad = _round_up(c_out_blk, 16)               # bf16 sublane granule, not 128

    # TODO(synk): replace the HBM-materialized im2col with in-kernel DMA of shifted raw-input
    # windows (pl.ANY + make_async_copy) and 16 accumulated tap matmuls per output tile.
    patches = _im2col_tap_major(x.astype(jnp.bfloat16), h_out, w_out)   # (N, K, HW) bf16
    patches = jnp.pad(patches, ((0, 0), (0, k_pad - k), (0, hw_pad - hw)))

    # Tap-major weight flattening matching the patch K order, grouped over output channels.
    w_mat = weight.transpose(0, 2, 3, 1).reshape(c_out, k)
    w_mat = w_mat.reshape(groups, c_out_blk, k)
    w_mat = jnp.pad(w_mat, ((0, 0), (0, c_out_blk_pad - c_out_blk), (0, k_pad - k)))
    w_mat = w_mat.astype(jnp.bfloat16)

    kernel = functools.partial(_unet_down_kernel, hw_true=hw, hw_pad=hw_pad,
                               c_out_blk=c_out_blk, tile_hw=tile_hw, n_tiles=n_tiles)

    out = pl.pallas_call(
        kernel,
        out_shape=jax.ShapeDtypeStruct((n, c_out, hw_pad), jnp.float32),
        grid_spec=pltpu.PrefetchScalarGridSpec(
            num_scalar_prefetch=0,
            grid=(n, groups, n_tiles),
            in_specs=[
                pl.BlockSpec((1, k_pad, tile_hw), lambda b, g, t: (b, 0, t)),
                # Weight block index only depends on g, so it is re-DMA'd only on group change.
                pl.BlockSpec((1, c_out_blk_pad, k_pad), lambda b, g, t: (g, 0, 0)),
            ],
            out_specs=pl.BlockSpec((1, c_out_blk, hw_pad), lambda b, g, t: (b, g, 0)),
            scratch_shapes=[pltpu.VMEM((c_out_blk, 1), jnp.float32)],
        ),
        compiler_params=pltpu.CompilerParams(
            dimension_semantics=("parallel", "parallel", "arbitrary"),
            vmem_limit_bytes=_VMEM_LIMIT),
    )(patches, w_mat)                                      # (N, c_out, hw_pad) f32

    # Channel-major already; just drop hw padding and reshape (no NHWC->NCHW transpose).
    return out[:, :, :hw].reshape(n, c_out, h_out, w_out)


def _reference(x, weight):
    """Pure-JAX reference: f32 conv + instance norm + leaky relu (NCHW)."""
    y = lax.conv_general_dilated(
        x, weight, window_strides=(STRIDE, STRIDE),
        padding=((PAD, PAD), (PAD, PAD)),
        dimension_numbers=("NCHW", "OIHW", "NCHW"),
        precision=lax.Precision.HIGHEST)
    mean = jnp.mean(y, axis=(2, 3), keepdims=True)
    var = jnp.mean((y - mean) ** 2, axis=(2, 3), keepdims=True)
    y = (y - mean) * lax.rsqrt(var + EPS)
    return jnp.where(y >= 0, y, NEG_SLOPE * y)


if __name__ == "__main__":
    # Small shapes consistent with the module's forward (dropout=0.0, normalize=True defaults).
    N, C_IN, C_OUT, H, W = 2, 4, 8, 16, 16

    key = jax.random.PRNGKey(0)
    kx, kw = jax.random.split(key)
    x = jax.random.normal(kx, (N, C_IN, H, W), dtype=jnp.float32)
    # Deterministic synthetic weights (pix2pix-style N(0, 0.02) init), bias=False in the module.
    weight = 0.02 * jax.random.normal(kw, (C_OUT, C_IN, KH, KW), dtype=jnp.float32)

    out = jax.block_until_ready(unet_down(x, weight))

    # Tight check: reference fed the same bf16-quantized inputs the kernel's MXU sees
    # (validates im2col / matmul / fused-norm math to ~f32 accuracy).
    xq = x.astype(jnp.bfloat16).astype(jnp.float32)
    wq = weight.astype(jnp.bfloat16).astype(jnp.float32)
    ref_q = jax.block_until_ready(_reference(xq, wq))
    np.testing.assert_allclose(np.asarray(out), np.asarray(ref_q), rtol=2e-3, atol=2e-3)

    # Loose check against the full-f32 reference (bf16 MXU inputs cost ~1% on normalized outputs).
    ref = jax.block_until_ready(_reference(x, weight))
    np.testing.assert_allclose(np.asarray(out), np.asarray(ref), rtol=3e-2, atol=3e-2)

    print("KERNEL_OK")
</pallas_src>

<mosaic_0001>
module attributes {stable_mosaic.version = 11 : i64} {
  func.func @_unet_down_kernel(%arg0: i32, %arg1: i32, %arg2: i32, %arg3: memref<1x128x128xbf16, #tpu.memory_space<vmem>>, %arg4: memref<1x16x128xbf16, #tpu.memory_space<vmem>>, %arg5: memref<1x8x128xf32, #tpu.memory_space<vmem>>, %arg6: memref<8x1xf32, #tpu.memory_space<vmem>>) attributes {dimension_semantics = [#tpu.dimension_semantics<parallel>, #tpu.dimension_semantics<parallel>, #tpu.dimension_semantics<arbitrary>], iteration_bounds = array<i64: 2, 1, 1>, scalar_prefetch = 0 : i64, scratch_operands = 1 : i64, tpu.core_type = #tpu.core_type<tc>, window_params = [{transform_indices = @transform_0, window_bounds = array<i64: 1, 128, 128>}, {transform_indices = @transform_1, window_bounds = array<i64: 1, 16, 128>}, {transform_indices = @transform_2, window_bounds = array<i64: 1, 8, 128>}]} {
    %c0_i32 = arith.constant 0 : i32
    %0 = arith.cmpi eq, %arg2, %c0_i32 : i32
    %1 = arith.extui %0 : i1 to i32
    %c0_i32_0 = arith.constant 0 : i32
    %2 = arith.cmpi ne, %1, %c0_i32_0 : i32
    scf.if %2 {
      %cst_16 = arith.constant 0.000000e+00 : f32
      %20 = vector.broadcast %cst_16 : f32 to vector<8x1xf32>
      %c0_17 = arith.constant 0 : index
      %c0_18 = arith.constant 0 : index
      %21 = vector.load %arg6[%c0_17, %c0_18] : memref<8x1xf32, #tpu.memory_space<vmem>>, vector<8x1xf32>
      tpu.vector_store %arg6[%c0_17, %c0_18], %20 {strides = array<i32>} : memref<8x1xf32, #tpu.memory_space<vmem>>, vector<8x1xf32>,
    } else {
    }
    %c0 = arith.constant 0 : index
    %c0_1 = arith.constant 0 : index
    %c0_2 = arith.constant 0 : index
    %3 = vector.load %arg4[%c0, %c0_1, %c0_2] : memref<1x16x128xbf16, #tpu.memory_space<vmem>>, vector<1x16x128xbf16>
    %4 = vector.shape_cast %3 : vector<1x16x128xbf16> to vector<16x128xbf16>
    %c0_3 = arith.constant 0 : index
    %c0_4 = arith.constant 0 : index
    %c0_5 = arith.constant 0 : index
    %5 = vector.load %arg3[%c0_3, %c0_4, %c0_5] : memref<1x128x128xbf16, #tpu.memory_space<vmem>>, vector<1x128x128xbf16>
    %6 = vector.shape_cast %5 : vector<1x128x128xbf16> to vector<128x128xbf16>
    %cst = arith.constant dense<0.000000e+00> : vector<16x128xf32>
    %7 = tpu.matmul %4, %6, %cst {dimension_numbers = #tpu.dot_dimension_numbers<[1], [0], [0], [1], [0, 0, 1, 1], [], []>} : vector<16x128xbf16>, vector<128x128xbf16>, vector<16x128xf32> -> vector<16x128xf32>
    %8 = vector.extract_strided_slice %7 {offsets = [0, 0], sizes = [8, 128], strides = [1, 1]} : vector<16x128xf32> to vector<8x128xf32>
    %c0_6 = arith.constant 0 : index
    %c0_7 = arith.constant 0 : index
    %9 = vector.load %arg6[%c0_6, %c0_7] : memref<8x1xf32, #tpu.memory_space<vmem>>, vector<8x1xf32>
    %cst_8 = arith.constant dense<0.000000e+00> : vector<8xf32>
    %10 = vector.multi_reduction <add>, %8, %cst_8 [1] : vector<8x128xf32> to vector<8xf32>
    %11 = vector.shape_cast %10 : vector<8xf32> to vector<8x1xf32>
    %12 = arith.addf %9, %11 : vector<8x1xf32>
    %c0_9 = arith.constant 0 : index
    %c0_10 = arith.constant 0 : index
    %13 = vector.load %arg6[%c0_9, %c0_10] : memref<8x1xf32, #tpu.memory_space<vmem>>, vector<8x1xf32>
    tpu.vector_store %arg6[%c0_9, %c0_10], %12 {strides = array<i32>} : memref<8x1xf32, #tpu.memory_space<vmem>>, vector<8x1xf32>,
    %c0_11 = arith.constant 0 : index
    %c0_12 = arith.constant 0 : index
    %c0_13 = arith.constant 0 : index
    %14 = vector.load %arg5[%c0_11, %c0_12, %c0_13] : memref<1x8x128xf32, #tpu.memory_space<vmem>>, vector<1x8x128xf32>
    %15 = vector.shape_cast %14 : vector<1x8x128xf32> to vector<8x128xf32>
    %16 = vector.shape_cast %8 : vector<8x128xf32> to vector<1x8x128xf32>
    tpu.vector_store %arg5[%c0_11, %c0_12, %c0_13], %16 {strides = array<i32>} : memref<1x8x128xf32, #tpu.memory_space<vmem>>, vector<1x8x128xf32>,
    %c0_i32_14 = arith.constant 0 : i32
    %17 = arith.cmpi eq, %arg2, %c0_i32_14 : i32
    %18 = arith.extui %17 : i1 to i32
    %c0_i32_15 = arith.constant 0 : i32
    %19 = arith.cmpi ne, %18, %c0_i32_15 : i32
    scf.if %19 {
      %c0_16 = arith.constant 0 : index
      %c0_17 = arith.constant 0 : index
      %20 = vector.load %arg6[%c0_16, %c0_17] : memref<8x1xf32, #tpu.memory_space<vmem>>, vector<8x1xf32>
      %cst_18 = arith.constant 1.562500e-02 : f32
      %21 = vector.broadcast %cst_18 : f32 to vector<8x1xf32>
      %22 = arith.mulf %20, %21 : vector<8x1xf32>
      %c0_19 = arith.constant 0 : index
      %c0_20 = arith.constant 0 : index
      %c0_21 = arith.constant 0 : index
      %23 = vector.load %arg5[%c0_19, %c0_20, %c0_21] : memref<1x8x128xf32, #tpu.memory_space<vmem>>, vector<1x8x128xf32>
      %24 = vector.shape_cast %23 : vector<1x8x128xf32> to vector<8x128xf32>
      %25 = vector.broadcast %22 : vector<8x1xf32> to vector<8x128xf32>
      %26 = arith.subf %24, %25 : vector<8x128xf32>
      %27 = arith.mulf %26, %26 : vector<8x128xf32>
      %cst_22 = arith.constant dense<0.000000e+00> : vector<8xf32>
      %28 = vector.multi_reduction <add>, %27, %cst_22 [1] : vector<8x128xf32> to vector<8xf32>
      %29 = vector.shape_cast %28 : vector<8xf32> to vector<8x1xf32>
      %30 = arith.mulf %22, %22 : vector<8x1xf32>
      %cst_23 = arith.constant 6.400000e+01 : f32
      %31 = vector.broadcast %cst_23 : f32 to vector<8x1xf32>
      %32 = arith.mulf %31, %30 : vector<8x1xf32>
      %33 = arith.subf %29, %32 : vector<8x1xf32>
      %cst_24 = arith.constant 0.000000e+00 : f32
      %34 = vector.broadcast %cst_24 : f32 to vector<8x1xf32>
      %35 = arith.maximumf %33, %34 : vector<8x1xf32>
      %cst_25 = arith.constant 1.562500e-02 : f32
      %36 = vector.broadcast %cst_25 : f32 to vector<8x1xf32>
      %37 = arith.mulf %35, %36 : vector<8x1xf32>
      %cst_26 = arith.constant 9.99999974E-6 : f32
      %38 = vector.broadcast %cst_26 : f32 to vector<8x1xf32>
      %39 = arith.addf %37, %38 : vector<8x1xf32>
      %40 = math.rsqrt %39 : vector<8x1xf32>
      %41 = vector.broadcast %40 : vector<8x1xf32> to vector<8x128xf32>
      %42 = arith.mulf %26, %41 : vector<8x128xf32>
      %cst_27 = arith.constant 2.000000e-01 : f32
      %43 = vector.broadcast %cst_27 : f32 to vector<8x128xf32>
      %44 = arith.mulf %43, %42 : vector<8x128xf32>
      %45 = arith.maximumf %42, %44 : vector<8x128xf32>
      %c0_28 = arith.constant 0 : index
      %c0_29 = arith.constant 0 : index
      %c0_30 = arith.constant 0 : index
      %46 = vector.load %arg5[%c0_28, %c0_29, %c0_30] : memref<1x8x128xf32, #tpu.memory_space<vmem>>, vector<1x8x128xf32>
      %47 = vector.shape_cast %46 : vector<1x8x128xf32> to vector<8x128xf32>
      %48 = vector.shape_cast %45 : vector<8x128xf32> to vector<1x8x128xf32>
      tpu.vector_store %arg5[%c0_28, %c0_29, %c0_30], %48 {strides = array<i32>} : memref<1x8x128xf32, #tpu.memory_space<vmem>>, vector<1x8x128xf32>,
    } else {
    }
    return
  }
  func.func @transform_0(%arg0: i32, %arg1: i32, %arg2: i32) -> (i32, i32, i32) {
    %c0_i32 = arith.constant 0 : i32
    %c0_i32_0 = arith.constant 0 : i32
    return %arg0, %c0_i32, %arg2 : i32, i32, i32
  }
  func.func @transform_1(%arg0: i32, %arg1: i32, %arg2: i32) -> (i32, i32, i32) {
    %c0_i32 = arith.constant 0 : i32
    %c0_i32_0 = arith.constant 0 : i32
    %c0_i32_1 = arith.constant 0 : i32
    return %arg1, %c0_i32, %c0_i32_0 : i32, i32, i32
  }
  func.func @transform_2(%arg0: i32, %arg1: i32, %arg2: i32) -> (i32, i32, i32) {
    %c0_i32 = arith.constant 0 : i32
    %c0_i32_0 = arith.constant 0 : i32
    return %arg0, %arg1, %c0_i32 : i32, i32, i32
  }
}

</mosaic_0001>

<bundles_post_ra>
// kernel: unet_down.1
= control target key start
LH: loop header
LB: loop body
LE: loop exit
PB: predicated region body
PF: predicated region fallthrough
CT: control target
= control target key end

     0   :  { %7 = vsyncpa [#allocation4], 0  ;;  %s1016_s0 = inlined_call_operand.hbm [shape: bf16[2,128,128], index: 0, kind: input, shape index: {}]   ;;  %s1017_s1 = inlined_call_operand.hbm [shape: bf16[1,16,128], index: 1, kind: input, shape index: {}]   ;;  %s1018_s2 = inlined_call_operand.hbm [shape: f32[2,8,128], index: 2, kind: output, shape index: {}]  }
   0x1   :  { %9 = vsyncpa [#allocation4 + $0x1], 0 }
   0x2   :  { %10 = vsyncpa [#allocation7], 0 }
   0x3   :  { %11 = vsyncpa [#allocation5], 0 }
   0x4   :  { %13 = vsyncpa [#allocation5 + $0x1], 0  ;;  %s792_s9 = smov 0   ;;  %s794_s10 = smov 0  }
   0x5   :  { %s796_s11 = smov 0   ;;  %s798_s12 = smov 0  }
   0x6   :  { %s800_s13 = smov 0   ;;  %s802_s14 = smov 0  }
   0x7 LB: > { %s477_s15 = sadd.s32 4294967295, %s767_s14   ;;  %s478_s16 = sadd.s32 4294967294, %s767_s14   ;;  %s767_s14 = sphi %s802_s14, %s19_s14   ;;  %s763_s13 = sphi %s800_s13, %s1042_s13   ;;  %s759_s12 = sphi %s798_s12, %s1041_s12   ;;  %s755_s11 = sphi %s796_s11, %s1040_s11   ;;  %s751_s10 = sphi %s794_s10, %s1039_s10   ;;  %s747_s9 = sphi %s792_s9, %s1038_s9  }
   0x8   : > { %p60_p0 = scmp.ne.s32.totalorder %s751_s10, %s747_s9  ;;  %p826_p1 = scmp.eq.s32.totalorder %s477_s15, 0 }
   0x9   : > { %p830_p2 = scmp.eq.s32.totalorder %s477_s15, 1  ;;  %p118_p3 = scmp.eq.s32.totalorder %s478_s16, 1 }
   0xa   : > { %s1023_s17 = scalar_select %p826_p1, 1, 0 }
   0xb   : > { %s1024_s18 = scalar_select %p830_p2, 1, 0 }
   0xc   : > { %p836_p4 = por %p826_p1, %p60_p0  ;;  %p479_p5 = scmp.ge.s32.totalorder %s767_s14, 1 }
   0xd   : > { %p841_p6 = por %p118_p3, %p60_p0  ;;  %p125_p7 = scmp.lt.s32.totalorder %s767_s14, 3 }
   0xe   : > { %s1025_s19 = scalar_select %p836_p4, 1, 0 }
   0xf   : > { %s1026_s20 = scalar_select %p841_p6, 1, 0 }
  0x10   : > { %p846_p8 = pnand %p479_p5, %p125_p7  ;;  %s769_s22 = smov [#allocation6]  }
  0x11   : > { %s140_s23 = sshll.u32 %s769_s22, 4  ;;  %s38_s25 = sadd.s32 1, %s763_s13  ;;  %s141_s23 = int_to_ptr.vmem [resolvable:$true] %s140_s23 }
  0x12   : > { %s1027_s21 = scalar_select %p846_p8, 1, 0 }
  0x13   : > { %p540_p9 = pneg %p846_p8  ;;  %s623_s28 = scalar_lea.hbm %s1017_s1, 128 }
  0x14   : > { %p624_p12 = scmp.ne.s32.totalorder %s1017_s1, %s623_s28  ;;  %p630_p5 = scmp.lt.u32.totalorder %s623_s28, %s1017_s1 }
  0x15   : > { %p855_p11 = pnand %p540_p9, %p826_p1 }
  0x17   : > { %p625_p13 = pneg %p855_p11 }
  0x19   : > { %p626_p0 = pnand %p625_p13, %p624_p12 }
  0x1b   : > { %p627_p3 = pneg %p626_p0 }
  0x1d   : > { %p632_p7 = pnand %p630_p5, %p627_p3 }
  0x1f   : > { %635 = shalt.err (!%p632_p7)
}
  0x20   : > { %s636_s5 = scalar_lea.vmem %s141_s23, 128  ;;  %p644_p1 = scmp.lt.s32.totalorder %s141_s23, %s141_s23 }
  0x21   : > { %p637_p9 = scmp.ne.s32.totalorder %s141_s23, %s636_s5  ;;  %p645_p4 = scmp.lt.s32.totalorder %s636_s5, %s636_s5 }
  0x23   : > { %p639_p10 = pnand %p637_p9, %p625_p13  ;;  %p646_p8 = por %p645_p4, %p644_p1 }
  0x25   : > { %p640_p6 = pneg %p639_p10 }
  0x27   : > { %p647_p2 = pnand %p646_p8, %p640_p6 }
  0x29   : > { %650 = shalt.err (!%p647_p2)
}
  0x2a   : > { %s770_s6 = smov 64   ;;  %s771_s7 = smov 4  }
  0x2b   : > { %543 = dma.hbm_to_vmem [thread:$0]  (!%p855_p11), %s1017_s1, 128, %s141_s23, [#allocation7], %s770_s6, %s770_s6, %s771_s7  }
  0x2c   : > { %p40_p1 = scmp.ge.s32.totalorder %s38_s25, 2  ;;  %s47_s16 = sadd.s32 1, %s755_s11 }
  0x2d   : > { %p54_p2 = scmp.ne.s32.totalorder %s755_s11, %s751_s10  ;;  %p55_p4 = scmp.eq.s32.totalorder %s767_s14, 0 }
  0x2e   : > { %s1044_s25 = smov (%p40_p1, %s38_s25), 0  ;;  %p1030_p8 = scmp.ne.s32.totalorder %s1024_s18, 0 }
  0x2f   : > { %p885_p6 = por %p55_p4, %p54_p2  ;;  %s42_s26 = ssub.s32 %s763_s13, %s1044_s25 }
  0x30   : > { %p891_p10 = por %p1030_p8, %p54_p2  ;;  %p553_p12 = scmp.lt.s32.totalorder %s767_s14, 2 }
  0x31   : > { %p45_p11 = scmp.eq.s32.totalorder %s42_s26, 0  ;;  %s154_s23 = sand.u32 1, %s755_s11  }
  0x32   : > { %s482_s27 = sshll.u32 %s154_s23, 6  ;;  %s502_s29 = sshll.u32 %s763_s13, 10 }
  0x33   : > { %s900_s28 = scalar_select %p45_p11, %s755_s11, %s47_s16  }
  0x34   : > { %s906_s4 = scalar_lea.hbm %s1016_s0, %s502_s29  ;;  %s158_s18 = scalar_lea.vmem [#allocation3], %s482_s27 }
  0x35   : > { %s166_s5 = sshll.u32 %s158_s18, 4  ;;  %p912_p13 = pnand %p553_p12, %p885_p6  ;;  %s908_s5 = int_to_ptr.vmem [resolvable:$true] %s166_s5 }
  0x36   : > { %s916_s15 = scalar_lea.sflag [#allocation4], %s154_s23  ;;  %s651_s16 = scalar_lea.hbm %s906_s4, 1024 }
  0x37   : > { %p652_p0 = scmp.ne.s32.totalorder %s906_s4, %s651_s16  ;;  %p653_p3 = pneg %p912_p13 }
  0x38   : > { %s656_s22 = scalar_lea.hbm %s1016_s0, 2048  ;;  %p657_p9 = scmp.lt.u32.totalorder %s906_s4, %s1016_s0 }
  0x39   : > { %p654_p5 = pnand %p653_p3, %p652_p0  ;;  %p658_p1 = scmp.lt.u32.totalorder %s656_s22, %s651_s16 }
  0x3a   : > { %p660_p4 = scmp.lt.u32.totalorder %s651_s16, %s906_s4 }
  0x3b   : > { %p655_p7 = pneg %p654_p5  ;;  %p659_p2 = por %p658_p1, %p657_p9 }
  0x3d   : > { %p661_p6 = por %p660_p4, %p659_p2 }
  0x3f   : > { %p662_p8 = pnand %p661_p6, %p655_p7 }
  0x41   : > { %665 = shalt.err (!%p662_p8)
}
  0x42   : > { %s666_s23 = scalar_lea.vmem %s908_s5, 1024  ;;  %s772_s3 = smov [#allocation3]  }
  0x43   : > { %p667_p12 = scmp.ne.s32.totalorder %s908_s5, %s666_s23  ;;  %s671_s18 = sshll.u32 %s772_s3, 4  ;;  %s672_s18 = int_to_ptr.vmem [resolvable:$false] %s671_s18 }
  0x44   : > { %s673_s26 = scalar_lea.vmem %s672_s18, 2048  ;;  %p674_p5 = scmp.lt.s32.totalorder %s908_s5, %s672_s18 }
  0x45   : > { %p669_p11 = pnand %p667_p12, %p653_p3  ;;  %p675_p9 = scmp.lt.s32.totalorder %s673_s26, %s666_s23 }
  0x47   : > { %p670_p0 = pneg %p669_p11  ;;  %p676_p1 = por %p675_p9, %p674_p5 }
  0x49   : > { %p677_p2 = pnand %p676_p1, %p670_p0 }
  0x4b   : > { %680 = shalt.err (!%p677_p2)
}
  0x4c   : > { %547 = dma.hbm_to_vmem [thread:$0]  (!%p912_p13), %s906_s4, 1024, %s908_s5, %s916_s15, %s770_s6, %s770_s6, %s771_s7  }
  0x4d   : > { %p1033_p3 = scmp.ne.s32.totalorder %s1027_s21, 0 }
  0x4e   : > { %s950_s16 = sand.u32 (!%p1033_p3), 1, %s751_s10   ;;  %p1034_p7 = scmp.ne.s32.totalorder (!%p1033_p3), %s1025_s19, 0 }
  0x4f   : > { %178 = sbr.rel (%p1033_p3) target bundleno = 930 (0x3a2), region = 28  ;;  %s486_s27 = sshll.u32 (!%p1033_p3), %s950_s16, 6 }
  0x50   : > { %s181_s22 = scalar_lea.sflag (!%p1033_p3), [#allocation4], %s950_s16  ;;  %s184_s29 = scalar_lea.vmem (!%p1033_p3), [#allocation3], %s486_s27 }
  0x56   : > { %734 = dma.done.wait (%p1034_p7), %s181_s22, 1024  }
  0x57   : > { %736 = vsyncadd (%p1034_p7), %s181_s22, 4294966272  ;;  %p1035_p4 = scmp.ne.s32.totalorder %s1023_s17, 0 }
  0x59   : > { %738 = dma.done.wait (%p1035_p4), [#allocation7], 128  }
  0x5a   : > { %740 = vsyncadd (%p1035_p4), [#allocation7], 4294967168  ;;  %v773_v0 = vmov 0.0   ;;  %vm774_vm0 = vmmov 0   ;;  %v612_v1 = vld [vmem:[%s184_s29] sm:$0xff]   ;;  %v613_v2 = vld [vmem:[%s184_s29 + $0x8] sm:$0xff]  }
  0x5b   : > { %512 = vmatprep.subr.bf16.mxu0 %v773_v0  ;;  %528 = vmatprep.mubr.msk.bf16.mxu0 %vm774_vm0, %v773_v0  ;;  %v614_v3 = vld [vmem:[%s184_s29 + $0x10] sm:$0xff]   ;;  %v615_v4 = vld [vmem:[%s184_s29 + $0x18] sm:$0xff]   ;;  %v616_v5 = vld [vmem:[%s184_s29 + $0x20] sm:$0xff]   ;;  %vm214_vm1 = vcmask 7168   ;;  %v775_v14 = vmov 0   ;;  %s488_s17 = sshll.u32 %s950_s16, 3 }
  0x5c   : > { %513 = vmatpush3.bf16.msra.mxu0 %v612_v1  ;;  %v617_v6 = vld [vmem:[%s184_s29 + $0x28] sm:$0xff]   ;;  %v618_v7 = vld [vmem:[%s184_s29 + $0x30] sm:$0xff]   ;;  %v619_v8 = vld [vmem:[%s184_s29 + $0x38] sm:$0xff]   ;;  %215 = vst.msk [vmem:[#allocation2] sm:$0xff] %vm214_vm1, %v773_v0  ;;  %610 = vset.pattern.permute.xlu0 %v775_v14  ;;  %s499_s19 = sshll.u32 %s759_s12, 7  ;;  %s208_s21 = scalar_lea.vmem [#allocation8], %s488_s17 }
  0x5d   : > { %514 = vmatprep.subr.bf16.mxu0 %v773_v0  ;;  %v620_v9 = vld [vmem:[#allocation6] sm:$0xff]   ;;  %611 = vset.pattern.permute.xlu1 %v775_v14  ;;  %s381_s6 = sshll.u32 %s208_s21, 4  ;;  %s967_s5 = scalar_lea.hbm %s1018_s2, %s499_s19  ;;  %s969_s6 = int_to_ptr.vmem [resolvable:$true] %s381_s6 }
  0x5e   : > { %s367_s8 = scalar_lea.sflag [#allocation5], %s950_s16  ;;  %s681_s15 = scalar_lea.vmem %s969_s6, 128 }
  0x5f   : > { %p682_p13 = scmp.ne.s32.totalorder %s969_s6, %s681_s15  ;;  %s776_s12 = smov [#allocation8]  }
  0x60   : > { %515 = vmatpush3.bf16.msra.mxu0 %v613_v2  ;;  %s685_s30 = sshll.u32 %s776_s12, 4  ;;  %s686_s30 = int_to_ptr.vmem [resolvable:$false] %s685_s30 }
  0x61   : > { %516 = vmatprep.subr.bf16.mxu0 %v773_v0  ;;  %p683_p6 = pnand %p682_p13, %p891_p10  ;;  %s687_s23 = scalar_lea.vmem %s686_s30, 256 }
  0x62   : > { %p688_p12 = scmp.lt.s32.totalorder %s969_s6, %s686_s30  ;;  %p689_p11 = scmp.lt.s32.totalorder %s687_s23, %s681_s15 }
  0x63   : > { %v328_v15 = vld [vmem:[#allocation2] sm:$0xff]  ;;  %p684_p8 = pneg %p683_p6 }
  0x64   : > { %517 = vmatpush3.bf16.msra.mxu0 %v614_v3  ;;  %p690_p0 = por %p689_p11, %p688_p12 }
  0x65   : > { %518 = vmatprep.subr.bf16.mxu0 %v773_v0 }
  0x66   : > { %p691_p5 = pnand %p690_p0, %p684_p8 }
  0x68   : > { %519 = vmatpush3.bf16.msra.mxu0 %v615_v4 }
  0x69   : > { %520 = vmatprep.subr.bf16.mxu0 %v773_v0 }
  0x6c   : > { %521 = vmatpush3.bf16.msra.mxu0 %v616_v5 }
  0x6d   : > { %522 = vmatprep.subr.bf16.mxu0 %v773_v0 }
  0x70   : > { %523 = vmatpush3.bf16.msra.mxu0 %v617_v6 }
  0x71   : > { %524 = vmatprep.subr.bf16.mxu0 %v773_v0 }
  0x74   : > { %525 = vmatpush3.bf16.msra.mxu0 %v618_v7 }
  0x75   : > { %526 = vmatprep.subr.bf16.mxu0 %v773_v0 }
  0x78   : > { %527 = vmatpush3.bf16.msra.mxu0 %v619_v8 }
  0x7b   : > { %529 = vmatmul.mubr.bf16.vlgmr.msra.gmra.mrb[0].mxu0 %v620_v9 }
 0x14e   : > { %v322_v10 = vpop.f32.mrb[0].mxu0 }
 0x14f   : > { %329 = vadd.xlane.f32.xlu0 %v322_v10  ;;  %v530_v11 = vpop.f32.mrb[1].mxu0 }
 0x150   : > { %v325_v12 = vpop.f32.mrb[2].mxu0 }
 0x151   : > { %v531_v13 = vpop.f32.mrb[3].mxu0 }
 0x1dc   : > { %v330_v16 = vpop.xlane.xlu0 %329 }
 0x1dd   : > { %v331_v17 = vadd.f32 %v330_v16, %v328_v15 }
 0x1df   : > { %333 = vst.msk [vmem:[#allocation2] sm:$0xff] %vm214_vm1, %v331_v17 }
 0x1e6   : > { %v338_v18 = vld [vmem:[#allocation2] sm:$0xff] }
 0x1e7   : > { %v339_v19 = vmul.f32 0.015625, %v338_v18 }
 0x1e9   : > { %343 = vperm.xlu0 %610, %v339_v19   ;;  %v350_v23 = vmul.f32 %v339_v19, %v339_v19 }
 0x1eb   : > { %v351_v24 = vmul.f32 64.0, %v350_v23 }
 0x268   : > { %v344_v20 = vpop.permute.xlu0 %343 }
 0x269   : > { %v346_v21 = vsub.f32 %v322_v10, %v344_v20 }
 0x26b   : > { %v347_v22 = vmul.f32 %v346_v21, %v346_v21 }
 0x26d   : > { %348 = vadd.xlane.f32.xlu1 %v347_v22 }
 0x2fa   : > { %v349_v25 = vpop.xlane.xlu1 %348 }
 0x2fb   : > { %v352_v26 = vsub.f32 %v349_v25, %v351_v24 }
 0x2fd   : > { %v353_v27 = vmax.f32 %v352_v26, 0.0 }
 0x2ff   : > { %v354_v28 = vmul.f32 0.015625, %v353_v27 }
 0x301   : > { %v355_v29 = vadd.f32 1e-05, %v354_v28 }
 0x303   : > { %621 = vrsqrt.f32 %v355_v29 }
 0x30d   : > { %v622_v30 = vpop.eup %621 }
 0x30e   : > { %359 = vperm.xlu1 %611, %v622_v30  }
 0x38d   : > { %v360_v31 = vpop.permute.xlu1 %359 }
 0x38e   : > { %v362_v32 = vmul.f32 %v360_v31, %v346_v21 }
 0x390   : > { %v363_v33 = vmul.f32 0.2, %v362_v32 }
 0x392   : > { %v364_v34 = vmax.f32 %v362_v32, %v363_v33 }
 0x394   : > { %365 = vst [vmem:[%s208_s21] sm:$0xff] %v364_v34 }
 0x395   : > { %694 = shalt.err (!%p691_p5)
}
 0x396   : > { %s695_s3 = scalar_lea.hbm %s967_s5, 128  ;;  %s699_s16 = scalar_lea.hbm %s1018_s2, 256 }
 0x397   : > { %p696_p9 = scmp.ne.s32.totalorder %s967_s5, %s695_s3  ;;  %p700_p3 = scmp.lt.u32.totalorder %s967_s5, %s1018_s2 }
 0x398   : > { %p701_p7 = scmp.lt.u32.totalorder %s699_s16, %s695_s3  ;;  %p703_p13 = scmp.lt.u32.totalorder %s695_s3, %s967_s5 }
 0x399   : > { %p697_p1 = pnand %p696_p9, %p891_p10 }
 0x39a   : > { %p702_p4 = por %p701_p7, %p700_p3 }
 0x39b   : > { %p698_p2 = pneg %p697_p1 }
 0x39c   : > { %p704_p6 = por %p703_p13, %p702_p4 }
 0x39e   : > { %p705_p8 = pnand %p704_p6, %p698_p2 }
 0x3a0   : > { %708 = shalt.err (!%p705_p8)
}
 0x3a1   : > { %538 = dma.vmem_to_hbm [thread:$0]  (%p891_p10), %s969_s6, 128, %s967_s5, %s367_s8  }
 0x3a2 PF: > { %s393_s29 = sand.u32 1, %s747_s9   ;;  %p1036_p12 = scmp.ne.s32.totalorder %s1026_s20, 0 }
 0x3a3   : > { %p1037_p11 = scmp.ge.s32.totalorder %s767_s14, 2  ;;  %s394_s17 = scalar_lea.sflag [#allocation5], %s393_s29 }
 0x3a5   : > { %p549_p0 = pnand %p1037_p11, %p1036_p12 }
 0x3a7   : > { %742 = dma.done.wait (!%p549_p0), %s394_s17, 128  }
 0x3a8   : > { %744 = vsyncadd (!%p549_p0), %s394_s17, 4294967168  ;;  %s19_s14 = sadd.s32 1, %s767_s14   ;;  %s1038_s9 = smov %s751_s10 }
 0x3a9   : > { %p16_p5 = scmp.ge.s32.totalorder %s19_s14, 4   ;;  %s1039_s10 = smov %s755_s11 }
 0x3aa   : > { %s1040_s11 = smov %s900_s28  ;;  %s1041_s12 = smov %s763_s13 }
 0x3ab   : > { %s1042_s13 = smov %s1044_s25  ;;  %18 = sbr.rel (!%p16_p5) target bundleno = 7 (0x7), region = 86 }
 0x3b2   :  { %399 = vsyncpa [#allocation4], 1 }
 0x3b3   :  { %401 = vsyncpa [#allocation4 + $0x1], 1 }
 0x3b4   :  { %402 = vsyncpa [#allocation7], 1 }
 0x3b5   :  { %403 = vsyncpa [#allocation5], 1 }
 0x3b6   :  { %405 = vsyncpa [#allocation5 + $0x1], 1 }

</bundles_post_ra>
